<compile_context>
chip_gen: v5e
topology: v5e:2x2
jax: 0.10.0
libtpu: 0.0.40
codegen_flags: <defaults>
</compile_context>

<pallas_src>
import numpy as np
import jax
import jax.numpy as jnp
from jax.experimental import pallas as pl
from jax.experimental.pallas import tpu as pltpu


ACS_MASK_DICT = {'320x8': [154, 166], '320x4': [147, 173],
                 '256x8': [122, 132], '256x4': [118, 137]}


def _cdiv(a, b):
    return -(-a // b)


def _round_up(x, m):
    return _cdiv(x, m) * m


def centered_dft_matrix(n):
    """Complex (n, n) matrix A with A @ v == fftshift(fft(ifftshift(v), norm='ortho'))."""
    eye = np.eye(n, dtype=np.complex128)
    f = np.fft.ifftshift(eye, axes=0)
    f = np.fft.fft(f, axis=0, norm='ortho')
    f = np.fft.fftshift(f, axes=0)
    return f


def _acs_band_operator(w, lo, hi, min_cols=128):
    """Real (2W, >=128) operator B_ri: for a row vector x of interleaved (re, im) pairs,
    x @ B_ri is the interleaved (re, im) centered ortho DFT of x restricted to the ACS
    k-space columns [lo, hi), zero-padded along columns to a lane-dense width (>=128)."""
    a = centered_dft_matrix(w)          # column convention: y = A @ x
    b = a.T[:, lo:hi]                   # row convention:    Y = X @ B ; keep ACS band only
    nb = hi - lo
    bri = np.zeros((2 * w, 2 * nb), np.float32)
    bri[0::2, 0::2] = b.real            # re_k -> re_j
    bri[0::2, 1::2] = b.imag            # re_k -> im_j
    bri[1::2, 0::2] = -b.imag           # im_k -> re_j
    bri[1::2, 1::2] = b.real            # im_k -> im_j
    cols = max(min_cols, _round_up(2 * nb, 128))
    if cols > 2 * nb:
        bri = np.pad(bri, ((0, 0), (0, cols - 2 * nb)))   # zero cols add 0 to the norm
    return bri


def _tpu_generation():
    try:
        kind = jax.devices()[0].device_kind.lower()
    except Exception:
        return 6
    for g in (7, 6, 5, 4):
        if ('v%d' % g) in kind:
            return g
    return 6


def _nacs_kernel(out_ref, lab_ref, op_ref, part_ref):
    # out_ref / lab_ref : (TM, 2W) f32 rows of interleaved (re, im) image samples
    # op_ref            : (2W, 128) bf16 ACS-band DFT operator (constant index_map ->
    #                     Pallas DMAs it once; ~128-160 KiB, negligible VMEM)
    # part_ref          : (1, 8, 128) f32 lane-dense partial sums
    x = out_ref[...]
    y = lab_ref[...]
    d = x - y                                   # image-domain diff, f32

    # Exact Parseval full-energy terms on the VPU (f32, no matmul).
    full_d = jnp.sum(d * d)
    full_l = jnp.sum(y * y)

    # ACS-band energy via the MXU: bf16 operands, f32 accumulation.  N=128 keeps the
    # matmul ~4-5x below the DMA roofline on every generation (incl. v5e).
    op = op_ref[...]
    kd = jnp.dot(d.astype(jnp.bfloat16), op, preferred_element_type=jnp.float32)
    kl = jnp.dot(y.astype(jnp.bfloat16), op, preferred_element_type=jnp.float32)
    band_d = jnp.sum(kd * kd)
    band_l = jnp.sum(kl * kl)

    num = full_d - band_d                       # ||fft_W(d) * (1-acs)||^2 contribution
    den = full_l - band_l                       # ||fft_W(l) * (1-acs)||^2 contribution

    # Merged lane-dense output block: sublane 0 = num, sublanes 1..7 = den.
    zeros = jnp.zeros((1, 8, 128), jnp.float32)
    sub = jax.lax.broadcasted_iota(jnp.int32, (1, 8, 128), 1)
    part_ref[...] = jnp.where(sub == 0, zeros + num, zeros + den)


def nacs_loss(out, label, mask_size, acc):
    """Pallas implementation of nacs(mask_size, acc).forward(out, label)."""
    B, C, H, W, two = out.shape
    assert two == 2 and W == mask_size
    lo, hi = ACS_MASK_DICT[str(mask_size) + acc]

    twoW = 2 * W
    R = B * C * H                               # independent rows (W-DFT is per-row)

    op = jnp.asarray(_acs_band_operator(W, lo, hi), jnp.bfloat16)
    n_band = op.shape[1]

    # Free reshapes (merge contiguous trailing dims) -- no strided re/im slicing.
    out2 = jnp.asarray(out, jnp.float32).reshape(R, twoW)
    lab2 = jnp.asarray(label, jnp.float32).reshape(R, twoW)

    # ---- generation-aware tile selection -------------------------------------------
    gen = _tpu_generation()
    if gen >= 7:
        target_block_bytes = 3 << 20   # 64 MiB physical VMEM, 2 TCs -> tighter budget
        vmem_limit = 48 << 20
        min_steps = 4                  # >= 2 grid steps per TensorCore
        even_grid = True               # balanced megacore sharding
    else:
        target_block_bytes = 6 << 20   # 128 MiB VMEM: big blocks amortize ~0.35us/step
        vmem_limit = 64 << 20
        min_steps = 2
        even_grid = False

    # Per-step VMEM ~= 4x block (2 inputs x 2 pipeline bufs) + ~1.5x block for bf16
    # casts / band results -> ~5.5x block; 6 MiB blocks stay well under 64 MiB.
    tm_cap = max(8, (target_block_bytes // (twoW * 4)) // 8 * 8)
    tm = max(8, min(tm_cap, _round_up(_cdiv(R, min_steps), 8)))
    G = _cdiv(R, tm)
    if even_grid and (G % 2):
        G += 1
    G = max(G, min_steps)
    R_pad = G * tm
    if R_pad != R:
        # Zero rows contribute exactly 0 to both num and den -> padding is exact.
        out2 = jnp.pad(out2, ((0, R_pad - R), (0, 0)))
        lab2 = jnp.pad(lab2, ((0, R_pad - R), (0, 0)))

    row_spec = pl.BlockSpec((tm, twoW), lambda g: (g, 0))
    op_spec = pl.BlockSpec((twoW, n_band), lambda g: (0, 0))
    part_spec = pl.BlockSpec((1, 8, 128), lambda g: (g, 0, 0))

    parts = pl.pallas_call(
        _nacs_kernel,
        out_shape=jax.ShapeDtypeStruct((G, 8, 128), jnp.float32),
        grid_spec=pltpu.PrefetchScalarGridSpec(
            num_scalar_prefetch=0,
            grid=(G,),
            in_specs=[row_spec, row_spec, op_spec],
            out_specs=part_spec,
        ),
        compiler_params=pltpu.CompilerParams(
            dimension_semantics=("parallel",),
            vmem_limit_bytes=vmem_limit),
    )(out2, lab2, op)

    num = jnp.sum(parts[:, 0, 0])
    den = jnp.sum(parts[:, 1, 0])

    # loss = 0.1 * ||fft2c(out-label)*(1-m)||_F / ||fft2c(label)*(1-m)||_F
    num = jnp.maximum(num, 0.0)   # guard against tiny negative from bf16 band term
    den = jnp.maximum(den, 0.0)
    return 0.1 * jnp.sqrt(num) / jnp.sqrt(den)


def _reference_loss(out, label, mask_size, acc):
    """Pure-JAX reference mirroring the PyTorch module (full fft2c + mask + norms)."""
    lo, hi = ACS_MASK_DICT[str(mask_size) + acc]
    mask = np.zeros((1, 1, mask_size, 1), np.float32)
    mask[0, 0, lo:hi, 0] = 1.0
    mask = jnp.asarray(mask)

    def fft2c(x):
        c = x[..., 0] + 1j * x[..., 1]
        c = jnp.fft.ifftshift(c, axes=(-2, -1))
        c = jnp.fft.fft2(c, norm='ortho')
        c = jnp.fft.fftshift(c, axes=(-2, -1))
        return jnp.stack([c.real, c.imag], axis=-1).astype(jnp.float32)

    o = fft2c(out) * (1.0 - mask)
    l = fft2c(label) * (1.0 - mask)
    return 0.1 * jnp.linalg.norm((o - l).ravel()) / jnp.linalg.norm(l.ravel())


if __name__ == "__main__":
    # Small shapes consistent with the module: W must be a valid mask_size (256).
    B, C, H, W = 2, 4, 16, 256
    mask_size, acc = 256, 'x4'

    key = jax.random.PRNGKey(0)
    k1, k2 = jax.random.split(key)
    out = jax.random.normal(k1, (B, C, H, W, 2), dtype=jnp.float32)
    label = jax.random.normal(k2, (B, C, H, W, 2), dtype=jnp.float32)

    loss = nacs_loss(out, label, mask_size, acc)
    loss = jax.block_until_ready(loss)

    ref = _reference_loss(out, label, mask_size, acc)
    np.testing.assert_allclose(float(loss), float(ref), rtol=5e-3, atol=1e-6)

    print("KERNEL_OK")
</pallas_src>

<mosaic_0001>
module attributes {stable_mosaic.version = 11 : i64} {
  func.func @_nacs_kernel(%arg0: i32, %arg1: memref<64x512xf32, #tpu.memory_space<vmem>>, %arg2: memref<64x512xf32, #tpu.memory_space<vmem>>, %arg3: memref<512x128xbf16, #tpu.memory_space<vmem>>, %arg4: memref<1x8x128xf32, #tpu.memory_space<vmem>>) attributes {dimension_semantics = [#tpu.dimension_semantics<parallel>], iteration_bounds = array<i64: 2>, scalar_prefetch = 0 : i64, scratch_operands = 0 : i64, tpu.core_type = #tpu.core_type<tc>, window_params = [{transform_indices = @transform_0, window_bounds = array<i64: 64, 512>}, {transform_indices = @transform_1, window_bounds = array<i64: 64, 512>}, {pipeline_mode = #tpu.pipeline_mode<synchronous>, transform_indices = @transform_2, window_bounds = array<i64: 512, 128>}, {transform_indices = @transform_3, window_bounds = array<i64: 1, 8, 128>}]} {
    %c0 = arith.constant 0 : index
    %c0_0 = arith.constant 0 : index
    %0 = vector.load %arg1[%c0, %c0_0] : memref<64x512xf32, #tpu.memory_space<vmem>>, vector<64x512xf32>
    %c0_1 = arith.constant 0 : index
    %c0_2 = arith.constant 0 : index
    %1 = vector.load %arg2[%c0_1, %c0_2] : memref<64x512xf32, #tpu.memory_space<vmem>>, vector<64x512xf32>
    %2 = arith.subf %0, %1 : vector<64x512xf32>
    %3 = arith.mulf %2, %2 : vector<64x512xf32>
    %4 = vector.shape_cast %3 : vector<64x512xf32> to vector<1x64x512xf32>
    %cst = arith.constant dense<0.000000e+00> : vector<1xf32>
    %5 = vector.multi_reduction <add>, %4, %cst [1, 2] : vector<1x64x512xf32> to vector<1xf32>
    %6 = vector.shape_cast %5 : vector<1xf32> to vector<1x1x1xf32>
    %7 = vector.extract %6[0, 0, 0] : f32 from vector<1x1x1xf32>
    %8 = arith.mulf %1, %1 : vector<64x512xf32>
    %9 = vector.shape_cast %8 : vector<64x512xf32> to vector<1x64x512xf32>
    %cst_3 = arith.constant dense<0.000000e+00> : vector<1xf32>
    %10 = vector.multi_reduction <add>, %9, %cst_3 [1, 2] : vector<1x64x512xf32> to vector<1xf32>
    %11 = vector.shape_cast %10 : vector<1xf32> to vector<1x1x1xf32>
    %12 = vector.extract %11[0, 0, 0] : f32 from vector<1x1x1xf32>
    %c0_4 = arith.constant 0 : index
    %c0_5 = arith.constant 0 : index
    %13 = vector.load %arg3[%c0_4, %c0_5] : memref<512x128xbf16, #tpu.memory_space<vmem>>, vector<512x128xbf16>
    %14 = arith.truncf %2 : vector<64x512xf32> to vector<64x512xbf16>
    %cst_6 = arith.constant dense<0.000000e+00> : vector<64x128xf32>
    %15 = tpu.matmul %14, %13, %cst_6 {dimension_numbers = #tpu.dot_dimension_numbers<[1], [0], [0], [1], [0, 0, 1, 1], [], []>} : vector<64x512xbf16>, vector<512x128xbf16>, vector<64x128xf32> -> vector<64x128xf32>
    %16 = arith.truncf %1 : vector<64x512xf32> to vector<64x512xbf16>
    %cst_7 = arith.constant dense<0.000000e+00> : vector<64x128xf32>
    %17 = tpu.matmul %16, %13, %cst_7 {dimension_numbers = #tpu.dot_dimension_numbers<[1], [0], [0], [1], [0, 0, 1, 1], [], []>} : vector<64x512xbf16>, vector<512x128xbf16>, vector<64x128xf32> -> vector<64x128xf32>
    %18 = arith.mulf %15, %15 : vector<64x128xf32>
    %19 = vector.shape_cast %18 : vector<64x128xf32> to vector<1x64x128xf32>
    %cst_8 = arith.constant dense<0.000000e+00> : vector<1xf32>
    %20 = vector.multi_reduction <add>, %19, %cst_8 [1, 2] : vector<1x64x128xf32> to vector<1xf32>
    %21 = vector.shape_cast %20 : vector<1xf32> to vector<1x1x1xf32>
    %22 = vector.extract %21[0, 0, 0] : f32 from vector<1x1x1xf32>
    %23 = arith.mulf %17, %17 : vector<64x128xf32>
    %24 = vector.shape_cast %23 : vector<64x128xf32> to vector<1x64x128xf32>
    %cst_9 = arith.constant dense<0.000000e+00> : vector<1xf32>
    %25 = vector.multi_reduction <add>, %24, %cst_9 [1, 2] : vector<1x64x128xf32> to vector<1xf32>
    %26 = vector.shape_cast %25 : vector<1xf32> to vector<1x1x1xf32>
    %27 = vector.extract %26[0, 0, 0] : f32 from vector<1x1x1xf32>
    %28 = arith.subf %7, %22 : f32
    %29 = arith.subf %12, %27 : f32
    %cst_10 = arith.constant 0.000000e+00 : f32
    %30 = vector.broadcast %cst_10 : f32 to vector<1x8x128xf32>
    %31 = tpu.iota {dimensions = array<i32: 1>} : vector<1x8x128xi32>
    %c0_i32 = arith.constant 0 : i32
    %32 = vector.broadcast %c0_i32 : i32 to vector<1x8x128xi32>
    %33 = arith.cmpi eq, %31, %32 : vector<1x8x128xi32>
    %34 = vector.broadcast %28 : f32 to vector<1x8x128xf32>
    %35 = arith.addf %30, %34 : vector<1x8x128xf32>
    %36 = vector.broadcast %29 : f32 to vector<1x8x128xf32>
    %37 = arith.addf %30, %36 : vector<1x8x128xf32>
    %38 = arith.select %33, %35, %37 : vector<1x8x128xi1>, vector<1x8x128xf32>
    %c0_11 = arith.constant 0 : index
    %c0_12 = arith.constant 0 : index
    %c0_13 = arith.constant 0 : index
    %39 = vector.load %arg4[%c0_11, %c0_12, %c0_13] : memref<1x8x128xf32, #tpu.memory_space<vmem>>, vector<1x8x128xf32>
    tpu.vector_store %arg4[%c0_11, %c0_12, %c0_13], %38 {strides = array<i32>} : memref<1x8x128xf32, #tpu.memory_space<vmem>>, vector<1x8x128xf32>,
    return
  }
  func.func @transform_0(%arg0: i32) -> (i32, i32) {
    %c0_i32 = arith.constant 0 : i32
    %c0_i32_0 = arith.constant 0 : i32
    return %arg0, %c0_i32 : i32, i32
  }
  func.func @transform_1(%arg0: i32) -> (i32, i32) {
    %c0_i32 = arith.constant 0 : i32
    %c0_i32_0 = arith.constant 0 : i32
    return %arg0, %c0_i32 : i32, i32
  }
  func.func @transform_2(%arg0: i32) -> (i32, i32) {
    %c0_i32 = arith.constant 0 : i32
    %c0_i32_0 = arith.constant 0 : i32
    %c0_i32_1 = arith.constant 0 : i32
    return %c0_i32, %c0_i32_0 : i32, i32
  }
  func.func @transform_3(%arg0: i32) -> (i32, i32, i32) {
    %c0_i32 = arith.constant 0 : i32
    %c0_i32_0 = arith.constant 0 : i32
    %c0_i32_1 = arith.constant 0 : i32
    return %arg0, %c0_i32, %c0_i32_0 : i32, i32, i32
  }
}

</mosaic_0001>

<bundles_post_ra>
// kernel: tpu_custom_call.1
= control target key start
LH: loop header
LB: loop body
LE: loop exit
PB: predicated region body
PF: predicated region fallthrough
CT: control target
= control target key end

     0   :  { %s2282_s0 = inlined_call_operand.hbm [shape: f32[128,512], index: 0, kind: input, shape index: {}]   ;;  %s2283_s1 = inlined_call_operand.hbm [shape: f32[128,512], index: 1, kind: input, shape index: {}]   ;;  %s2284_s2 = inlined_call_operand.hbm [shape: bf16[512,128], index: 2, kind: input, shape index: {}]   ;;  %s2285_s3 = inlined_call_operand.hbm [shape: f32[2,8,128], index: 3, kind: output, shape index: {}]  }
   0x1   :  { %2289 = sst [smem:[#allocation16_spill]] %s2282_s0 }
   0x2   :  { %2290 = sst [smem:[#allocation17_spill]] %s2284_s2 }
   0x3   :  { %8 = vsyncpa [#allocation3], 0 }
   0x4   :  { %10 = vsyncpa [#allocation3 + $0x1], 0 }
   0x5   :  { %11 = vsyncpa [#allocation6], 0 }
   0x6   :  { %13 = vsyncpa [#allocation6 + $0x1], 0 }
   0x7   :  { %14 = vsyncpa [#allocation4], 0 }
   0x8   :  { %16 = vsyncpa [#allocation4 + $0x1], 0  ;;  %s1640_s12 = smov 0   ;;  %s1642_s13 = smov 0  }
   0x9   :  { %s1644_s14 = smov 0   ;;  %s1646_s15 = smov 0  }
   0xa LB: > { %s1661_s16 = sadd.s32 4294967295, %s1613_s15   ;;  %s1190_s17 = sadd.s32 4294967294, %s1613_s15   ;;  %s1613_s15 = sphi %s1646_s15, %s2308_s15   ;;  %s1609_s14 = sphi %s1644_s14, %s2307_s14   ;;  %s1605_s13 = sphi %s1642_s13, %s2306_s13   ;;  %s1601_s12 = sphi %s1640_s12, %s2305_s12  }
   0xb   : > { %p42_p0 = scmp.ne.s32.totalorder %s1605_s13, %s1601_s12  ;;  %p43_p1 = scmp.eq.s32.totalorder %s1661_s16, 0 }
   0xc   : > { %p113_p2 = scmp.eq.s32.totalorder %s1661_s16, 1  ;;  %p119_p3 = scmp.eq.s32.totalorder %s1190_s17, 1 }
   0xd   : > { %p1670_p4 = por %p43_p1, %p42_p0  ;;  %p1191_p5 = scmp.ge.s32.totalorder %s1613_s15, 1 }
   0xe   : > { %p1675_p6 = por %p119_p3, %p42_p0  ;;  %p126_p7 = scmp.lt.s32.totalorder %s1613_s15, 3 }
   0xf   : > { %s2293_s2 = sld [smem:[#allocation17_spill]]  ;;  %s1615_s24 = smov [#allocation7]  }
  0x10   : > { %p1683_p8 = pnand %p1191_p5, %p126_p7  ;;  %s139_s25 = sshll.u32 %s1615_s24, 4  ;;  %s140_s25 = int_to_ptr.vmem [resolvable:$true] %s139_s25 }
  0x11   : > { %s1693_s26 = sadd.s32 1, %s1613_s15   ;;  %s1616_s27 = smov 64  }
  0x12   : > { %p1393_p9 = pneg %p1683_p8  ;;  %s1617_s28 = smov 4  }
  0x13   : > { %s26_s29 = ssub.s32 %s1613_s15, %s1693_s26  ;;  %s29_s30 = sadd.s32 1, %s1609_s14 }
  0x14   : > { %p1394_p10 = pnand %p1393_p9, %p43_p1  ;;  %p27_p12 = scmp.eq.s32.totalorder %s26_s29, 0 }
  0x15   : > { %s137_s22 = sshll.u32 %s2293_s2, 4  ;;  %p36_p13 = scmp.ne.s32.totalorder %s1609_s14, %s1605_s13  ;;  %s138_s22 = int_to_ptr.hbm [resolvable:$true] %s137_s22 }
  0x16   : > { %1396 = dma.hbm_to_vmem [thread:$0]  (!%p1394_p10), %s138_s22, 4096, %s140_s25, [#allocation6], %s1616_s27, %s1616_s27, %s1617_s28  }
  0x17   : > { %p37_p0 = scmp.eq.s32.totalorder %s1613_s15, 0  ;;  %p1409_p3 = scmp.lt.s32.totalorder %s1613_s15, 2 }
  0x18   : > { %s1703_s4 = scalar_select %p27_p12, %s1609_s14, %s29_s30  }
  0x19   : > { %p38_p5 = por %p37_p0, %p36_p13  ;;  %p1707_p7 = por %p113_p2, %p36_p13 }
  0x1a   : > { %s153_s6 = sand.u32 1, %s1609_s14   ;;  %s1340_s7 = sshll.u32 %s1613_s15, 8 }
  0x1b   : > { %s1713_s8 = sshll.u32 %s153_s6, 8  ;;  %s2296_s0 = sld [smem:[#allocation16_spill]] }
  0x1c   : > { %s157_s20 = scalar_lea.vmem [#allocation2], %s1713_s8  ;;  %p1721_p9 = pnand %p1409_p3, %p38_p5 }
  0x1d   : > { %s166_s21 = sshll.u32 %s157_s20, 4  ;;  %s186_s27 = scalar_lea.hbm %s2283_s1, %s1340_s7  ;;  %s167_s21 = int_to_ptr.vmem [resolvable:$true] %s166_s21 }
  0x1e   : > { %s154_s28 = scalar_lea.sflag [#allocation3], %s153_s6  ;;  %p1483_p10 = pneg %p1721_p9 }
  0x21   : > { %s163_s11 = scalar_lea.hbm %s2296_s0, %s1340_s7 }
  0x22   : > { %s164_s17 = sshll.u32 %s163_s11, 4  ;;  %s1486_s11 = scalar_lea.hbm %s2296_s0, 512  ;;  %s165_s17 = int_to_ptr.hbm [resolvable:$true] %s164_s17 }
  0x23   : > { %s1479_s29 = sshra.s32 %s165_s17, 4  ;;  %s1480_s29 = int_to_ptr.hbm [resolvable:$true] %s1479_s29 }
  0x24   : > { %s1481_s30 = scalar_lea.hbm %s1480_s29, 256  ;;  %p1487_p0 = scmp.lt.s32.totalorder %s1480_s29, %s2296_s0 }
  0x25   : > { %p1482_p2 = scmp.ne.s32.totalorder %s1480_s29, %s1481_s30  ;;  %p1488_p3 = scmp.lt.s32.totalorder %s1486_s11, %s1481_s30 }
  0x27   : > { %p1484_p12 = pnand %p1483_p10, %p1482_p2  ;;  %p1489_p5 = por %p1488_p3, %p1487_p0 }
  0x29   : > { %p1485_p13 = pneg %p1484_p12 }
  0x2b   : > { %p1490_p11 = pnand %p1489_p5, %p1485_p13 }
  0x2d   : > { %1493 = shalt.err (!%p1490_p11)
}
  0x2e   : > { %s1618_s6 = smov 512   ;;  %s1619_s7 = smov 32  }
  0x2f   : > { %1400 = dma.hbm_to_vmem [thread:$0]  (!%p1721_p9), %s165_s17, 4096, %s167_s21, %s154_s28, %s1618_s6, %s1618_s6, %s1619_s7  }
  0x30   : > { %s187_s25 = sshll.u32 %s186_s27, 4  ;;  %s180_s2 = scalar_lea.vmem [#allocation5], %s1713_s8  ;;  %s188_s25 = int_to_ptr.hbm [resolvable:$true] %s187_s25 }
  0x31   : > { %s189_s9 = sshll.u32 %s180_s2, 4  ;;  %s176_s10 = sand.u32 1, %s1613_s15   ;;  %s190_s9 = int_to_ptr.vmem [resolvable:$true] %s189_s9 }
  0x32   : > { %s177_s20 = scalar_lea.sflag [#allocation6], %s176_s10  ;;  %s1509_s29 = sshra.s32 %s188_s25, 4  ;;  %s1510_s29 = int_to_ptr.hbm [resolvable:$true] %s1509_s29 }
  0x33   : > { %s1511_s30 = scalar_lea.hbm %s1510_s29, 256  ;;  %s1516_s0 = scalar_lea.hbm %s2283_s1, 512 }
  0x34   : > { %p1512_p2 = scmp.ne.s32.totalorder %s1510_s29, %s1511_s30  ;;  %p1517_p13 = scmp.lt.s32.totalorder %s1510_s29, %s2283_s1 }
  0x35   : > { %p1518_p0 = scmp.lt.s32.totalorder %s1516_s0, %s1511_s30 }
  0x36   : > { %p1514_p11 = pnand %p1512_p2, %p1483_p10 }
  0x37   : > { %p1519_p3 = por %p1518_p0, %p1517_p13 }
  0x38   : > { %p1515_p12 = pneg %p1514_p11 }
  0x3a   : > { %p1520_p5 = pnand %p1519_p3, %p1515_p12 }
  0x3c   : > { %1523 = shalt.err (!%p1520_p5)
}
  0x3d   : > { %1403 = dma.hbm_to_vmem [thread:$0]  (!%p1721_p9), %s188_s25, 4096, %s190_s9, %s177_s20, %s1618_s6, %s1618_s6, %s1619_s7  }
  0x3e   : > { %201 = sbr.rel (%p1683_p8) target bundleno = 555 (0x22b), region = 32 }
  0x43   : > { %s1757_s2 = sand.u32 1, %s1605_s13  }
  0x44   : > { %s1203_s8 = sshll.u32 %s1757_s2, 8  ;;  %s204_s27 = scalar_lea.sflag [#allocation3], %s1757_s2 }
  0x45   : > { %s1761_s28 = scalar_lea.vmem [#allocation2], %s1203_s8 }
  0x46   : > { %1584 = dma.done.wait (%p1670_p4), %s204_s27, 4096  }
  0x47   : > { %1586 = vsyncadd (%p1670_p4), %s204_s27, 4294963200  ;;  %s213_s0 = sand.u32 1, %s1661_s16   ;;  %s1768_s22 = scalar_lea.vmem [#allocation5], %s1203_s8 }
  0x48   : > { %s214_s23 = scalar_lea.sflag [#allocation6], %s213_s0 }
  0x49   : > { %1588 = dma.done.wait (%p1670_p4), %s214_s23, 4096  }
  0x4a   : > { %1590 = vsyncadd (%p1670_p4), %s214_s23, 4294963200 }
  0x4b   : > { %1592 = dma.done.wait (%p43_p1), [#allocation6], 4096  }
  0x4c   : > { %1594 = vsyncadd (%p43_p1), [#allocation6], 4294963200  ;;  %v1778_v0 = vld [vmem:[#allocation7 + $0x38] sm:$0xff]  ;;  %v1788_v4 = vld [vmem:[#allocation7 + $0x30] sm:$0xff]  ;;  %s1206_s6 = sshll.u32 %s1757_s2, 3  ;;  %s1336_s25 = sshll.u32 %s1661_s16, 3 }
  0x4d   : > { %v1780_v1 = vld [vmem:[#allocation7 + $0x78] sm:$0xff]  ;;  %765 = vmatpush.bf16.msra.mxu0 %v1778_v0  ;;  %v1790_v5 = vld [vmem:[#allocation7 + $0x70] sm:$0xff]  ;;  %v1800_v8 = vld [vmem:[#allocation7 + $0x28] sm:$0xff]  ;;  %s1083_s29 = scalar_lea.hbm %s2285_s3, %s1336_s25  ;;  %s250_s11 = scalar_lea.vmem [#allocation8], %s1206_s6 }
  0x4e   : > { %v1782_v2 = vld [vmem:[#allocation7 + $0xb8] sm:$0xff]  ;;  %794 = vmatpush.bf16.msra.mxu1 %v1780_v1  ;;  %v1794_v6 = vld [vmem:[#allocation7 + $0xb0] sm:$0xff]  ;;  %v1802_v9 = vld [vmem:[#allocation7 + $0x68] sm:$0xff]  ;;  %s1085_s24 = sshll.u32 %s250_s11, 4  ;;  %s1087_s21 = sshll.u32 %s1083_s29, 4  ;;  %s1086_s24 = int_to_ptr.vmem [resolvable:$true] %s1085_s24  ;;  %s1088_s21 = int_to_ptr.hbm [resolvable:$true] %s1087_s21 }
  0x4f   : > { %v1784_v3 = vld [vmem:[#allocation7 + $0xf8] sm:$0xff]  ;;  %823 = vmatpush.bf16.msra.mxu2 %v1782_v2  ;;  %v1796_v7 = vld [vmem:[#allocation7 + $0xf0] sm:$0xff]  ;;  %v1806_v10 = vld [vmem:[#allocation7 + $0xa8] sm:$0xff]  ;;  %s1073_s16 = scalar_lea.sflag [#allocation4], %s1757_s2  ;;  %s1553_s27 = sshra.s32 %s1088_s21, 4  ;;  %s1554_s27 = int_to_ptr.hbm [resolvable:$true] %s1553_s27 }
  0x50   : > { %852 = vmatpush.bf16.msra.mxu3 %v1784_v3  ;;  %v1808_v11 = vld [vmem:[#allocation7 + $0xe8] sm:$0xff]  ;;  %v1812_v12 = vld [vmem:[#allocation7 + $0x20] sm:$0xff]  ;;  %v255_v24 = vld [vmem:[%s1761_s28 + $0x10] sm:$0xff]  ;;  %p1560_p9 = scmp.lt.s32.totalorder %s1554_s27, %s2285_s3 }
  0x51   : > { %766 = vmatpush.bf16.msra.mxu0 %v1788_v4  ;;  %v1814_v13 = vld [vmem:[#allocation7 + $0x60] sm:$0xff]  ;;  %v254_v20 = vld [vmem:[%s1761_s28 + $0x8] sm:$0xff]  ;;  %v1843_v25 = vld [vmem:[#allocation7 + $0x18] sm:$0xff] }
  0x52   : > { %795 = vmatpush.bf16.msra.mxu1 %v1790_v5  ;;  %v253_v14 = vld [vmem:[%s1761_s28] sm:$0xff]  ;;  %v1833_v21 = vld [vmem:[%s1768_s22 + $0x8] sm:$0xff]  ;;  %v1845_v26 = vld [vmem:[#allocation7 + $0x58] sm:$0xff] }
  0x53   : > { %824 = vmatpush.bf16.msra.mxu2 %v1794_v6  ;;  %v1819_v15 = vld [vmem:[#allocation7 + $0xa0] sm:$0xff]  ;;  %v1836_v22 = vsub.f32 %v254_v20, %v1833_v21  ;;  %v422_v23 = vmul.f32 %v1833_v21, %v1833_v21  ;;  %v1850_v28 = vld [vmem:[%s1768_s22 + $0x10] sm:$0xff]  ;;  %v1854_v29 = vld [vmem:[#allocation7 + $0x98] sm:$0xff] }
  0x54   : > { %853 = vmatpush.bf16.msra.mxu3 %v1796_v7  ;;  %v1821_v16 = vld [vmem:[#allocation7 + $0xe0] sm:$0xff]  ;;  %v1856_v30 = vld [vmem:[#allocation7 + $0xd8] sm:$0xff]  ;;  %v1865_v35 = vsub.f32 %v255_v24, %v1850_v28  ;;  %v423_v36 = vmul.f32 %v1850_v28, %v1850_v28  ;;  %v1873_v39 = vld [vmem:[#allocation7 + $0x10] sm:$0xff] }
  0x55   : > { %767 = vmatpush.bf16.msra.mxu0 %v1800_v8  ;;  %v1824_v17 = vld [vmem:[%s1768_s22] sm:$0xff]  ;;  %v350_v32 = vmul.f32 %v1836_v22, %v1836_v22  ;;  %v256_v37 = vld [vmem:[%s1761_s28 + $0x18] sm:$0xff]  ;;  %v1877_v41 = vld [vmem:[#allocation7 + $0x50] sm:$0xff] }
  0x56   : > { %796 = vmatpush.bf16.msra.mxu1 %v1802_v9  ;;  %v1827_v18 = vsub.f32 %v253_v14, %v1824_v17  ;;  %v421_v19 = vmul.f32 %v1824_v17, %v1824_v17  ;;  %v257_v31 = vld [vmem:[%s1761_s28 + $0x20] sm:$0xff]  ;;  %v1871_v38 = vld [vmem:[%s1768_s22 + $0x18] sm:$0xff]  ;;  %v258_v42 = vld [vmem:[%s1761_s28 + $0x28] sm:$0xff]  ;;  %v351_v44 = vmul.f32 %v1865_v35, %v1865_v35 }
  0x57   : > { %825 = vmatpush.bf16.msra.mxu2 %v1806_v10  ;;  %v1862_v33 = vld [vmem:[%s1768_s22 + $0x20] sm:$0xff]  ;;  %2298 = vst [vmem:[#allocation13_spill] sm:$0xff] %v1871_v38  ;;  %v1881_v43 = vld [vmem:[%s1768_s22 + $0x28] sm:$0xff]  ;;  %v1887_v46 = vld [vmem:[#allocation7 + $0x90] sm:$0xff]  ;;  %v1895_v49 = vsub.f32 %v256_v37, %v1871_v38  ;;  %v424_v54 = vmul.f32 %v1871_v38, %v1871_v38 }
  0x58   : > { %854 = vmatpush.bf16.msra.mxu3 %v1808_v11  ;;  %v349_v27 = vmul.f32 %v1827_v18, %v1827_v18  ;;  %v453_v34 = vadd.f32 %v422_v23, %v421_v19  ;;  %v1889_v47 = vld [vmem:[#allocation7 + $0xd0] sm:$0xff]  ;;  %v1892_v48 = vsub.f32 %v257_v31, %v1862_v33  ;;  %v425_v50 = vmul.f32 %v1862_v33, %v1862_v33  ;;  %v1905_v55 = vld [vmem:[#allocation7 + $0x8] sm:$0xff]  ;;  %v260_v61 = vld [vmem:[%s1761_s28 + $0x38] sm:$0xff] }
  0x59   : > { %768 = vmatpush.bf16.msra.mxu0 %v1812_v12  ;;  %v259_v51 = vld [vmem:[%s1761_s28 + $0x30] sm:$0xff]  ;;  %v1910_v57 = vsub.f32 %v258_v42, %v1881_v43  ;;  %v352_v58 = vmul.f32 %v1895_v49, %v1895_v49  ;;  %v1916_v59 = vld [vmem:[#allocation7 + $0x48] sm:$0xff]  ;;  %v426_v60 = vmul.f32 %v1881_v43, %v1881_v43  ;;  %v1922_v62 = vld [vmem:[%s1768_s22 + $0x38] sm:$0xff] }
  0x5a   : > { %797 = vmatpush.bf16.msra.mxu1 %v1814_v13  ;;  %v381_v40 = vadd.f32 %v350_v32, %v349_v27  ;;  %v454_v45 = vadd.f32 %v453_v34, %v423_v36  ;;  %v1901_v52 = vld [vmem:[%s1768_s22 + $0x30] sm:$0xff]  ;;  %v353_v56 = vmul.f32 %v1892_v48, %v1892_v48  ;;  %2300 = vst [vmem:[#allocation15_spill] sm:$0xff] %v1922_v62  ;;  %v1926_v14 = vld [vmem:[#allocation7 + $0x88] sm:$0xff]  ;;  %v261_v32 = vld [vmem:[%s1761_s28 + $0x40] sm:$0xff] }
  0x5b   : > { %826 = vmatpush.bf16.msra.mxu2 %v1819_v15  ;;  %2299 = vst [vmem:[#allocation14_spill] sm:$0xff] %v1901_v52  ;;  %v1928_v19 = vld [vmem:[#allocation7 + $0xc8] sm:$0xff]  ;;  %v354_v20 = vmul.f32 %v1910_v57, %v1910_v57  ;;  %v323_v23 = vsub.f32 %v259_v51, %v1901_v52  ;;  %v427_v27 = vmul.f32 %v1901_v52, %v1901_v52  ;;  %v1937_v34 = vld [vmem:[%s1768_s22 + $0x40] sm:$0xff]  ;;  %v263_v38 = vld [vmem:[%s1761_s28 + $0x50] sm:$0xff] }
  0x5c   : > { %855 = vmatpush.bf16.msra.mxu3 %v1821_v16  ;;  %v382_v53 = vadd.f32 %v381_v40, %v351_v44  ;;  %v455_v63 = vadd.f32 %v454_v45, %v424_v54  ;;  %v1939_v36 = vld [vmem:[#allocation7] sm:$0xff]  ;;  %v324_v40 = vsub.f32 %v260_v61, %v1922_v62  ;;  %v428_v45 = vmul.f32 %v1922_v62, %v1922_v62  ;;  %v262_v51 = vld [vmem:[%s1761_s28 + $0x48] sm:$0xff]  ;;  %v1969_v52 = vld [vmem:[%s1768_s22 + $0x50] sm:$0xff] }
  0x5d   : > { %769 = vmatpush.bf16.msra.mxu0 %v1843_v25  ;;  %v355_v37 = vmul.f32 %v323_v23, %v323_v23  ;;  %v1944_v44 = vld [vmem:[#allocation7 + $0x40] sm:$0xff]  ;;  %v429_v62 = vmul.f32 %v1937_v34, %v1937_v34 }
  0x5e   : > { %798 = vmatpush.bf16.msra.mxu1 %v1845_v26  ;;  %v383_v24 = vadd.f32 %v382_v53, %v352_v58  ;;  %v456_v31 = vadd.f32 %v455_v63, %v425_v50  ;;  %v1950_v53 = vld [vmem:[%s1768_s22 + $0x48] sm:$0xff]  ;;  %v1954_v54 = vld [vmem:[#allocation7 + $0x80] sm:$0xff]  ;;  %v356_v58 = vmul.f32 %v324_v40, %v324_v40  ;;  %v1959_v63 = vsub.f32 %v261_v32, %v1937_v34 }
  0x5f   : > { %827 = vmatpush.bf16.msra.mxu2 %v1854_v29 }
  0x60   : > { %856 = vmatpush.bf16.msra.mxu3 %v1856_v30  ;;  %v384_v42 = vadd.f32 %v383_v24, %v353_v56  ;;  %v457_v50 = vadd.f32 %v456_v31, %v426_v60  ;;  %v1956_v56 = vld [vmem:[#allocation7 + $0xc0] sm:$0xff]  ;;  %v557_v60 = vpack.c.bf16 %v1892_v48, %v1827_v18  ;;  %v558_v24 = vpack.c.bf16 %v1910_v57, %v1836_v22 }
  0x61   : > { %770 = vmatpush.bf16.msra.mxu0 %v1873_v39  ;;  %v357_v32 = vmul.f32 %v1959_v63, %v1959_v63  ;;  %v1975_v18 = vsub.f32 %v262_v51, %v1950_v53  ;;  %v560_v48 = vpack.c.bf16 %v324_v40, %v1895_v49  ;;  %v430_v57 = vmul.f32 %v1950_v53, %v1950_v53  ;;  %v265_v49 = vld [vmem:[%s1761_s28 + $0x60] sm:$0xff] }
  0x62   : > { %799 = vmatpush.bf16.msra.mxu1 %v1877_v41  ;;  %v385_v61 = vadd.f32 %v384_v42, %v354_v20  ;;  %v458_v31 = vadd.f32 %v457_v50, %v427_v27  ;;  %v559_v20 = vpack.c.bf16 %v323_v23, %v1865_v35  ;;  %v264_v35 = vld [vmem:[%s1761_s28 + $0x58] sm:$0xff]  ;;  %v1997_v40 = vld [vmem:[%s1768_s22 + $0x60] sm:$0xff]  ;;  %v431_v51 = vmul.f32 %v1969_v52, %v1969_v52 }
  0x63   : > { %828 = vmatpush.bf16.msra.mxu2 %v1887_v46  ;;  %v1984_v23 = vld [vmem:[%s1768_s22 + $0x58] sm:$0xff] }
  0x64   : > { %857 = vmatpush.bf16.msra.mxu3 %v1889_v47  ;;  %v386_v42 = vadd.f32 %v385_v61, %v355_v37  ;;  %v459_v22 = vadd.f32 %v458_v31, %v428_v45  ;;  %v358_v37 = vmul.f32 %v1975_v18, %v1975_v18  ;;  %v1991_v45 = vsub.f32 %v263_v38, %v1969_v52 }
  0x65   : > { %771 = vmatpush.bf16.msra.mxu0 %v1905_v55  ;;  %v2004_v38 = vsub.f32 %v264_v35, %v1984_v23  ;;  %v432_v31 = vmul.f32 %v1984_v23, %v1984_v23  ;;  %v268_v35 = vld [vmem:[%s1761_s28 + $0x78] sm:$0xff] }
  0x66   : > { %800 = vmatpush.bf16.msra.mxu1 %v1916_v59  ;;  %v387_v27 = vadd.f32 %v386_v42, %v356_v58  ;;  %v460_v50 = vadd.f32 %v459_v22, %v429_v62  ;;  %v359_v61 = vmul.f32 %v1991_v45, %v1991_v45  ;;  %v433_v42 = vmul.f32 %v1997_v40, %v1997_v40  ;;  %v2025_v22 = vld [vmem:[%s1768_s22 + $0x70] sm:$0xff] }
  0x67   : > { %829 = vmatpush.bf16.msra.mxu2 %v1926_v14 }
  0x68   : > { %858 = vmatpush.bf16.msra.mxu3 %v1928_v19  ;;  %v388_v58 = vadd.f32 %v387_v27, %v357_v32  ;;  %v461_v62 = vadd.f32 %v460_v50, %v430_v57  ;;  %v267_v32 = vld [vmem:[%s1761_s28 + $0x70] sm:$0xff] }
  0x69   : > { %772 = vmatpush.bf16.msra.mxu0 %v1939_v36 }
  0x6a   : > { %801 = vmatpush.bf16.msra.mxu1 %v1944_v44 }
  0x6b   : > { %830 = vmatpush.bf16.msra.mxu2 %v1954_v54 }
  0x6c   : > { %859 = vmatpush.bf16.msra.mxu3 %v1956_v56  ;;  %773 = vmatmul.bf16.vlgmr.msra.gmra.mxu0 %v557_v60  ;;  %v2015_v60 = vsub.f32 %v265_v49, %v1997_v40  ;;  %v331_v49 = vsub.f32 %v267_v32, %v2025_v22  ;;  %v2052_v32 = vld [vmem:[%s1768_s22 + $0x88] sm:$0xff] }
  0x6d   : > { %802 = vmatmul.bf16.vlgmr.msra.gmra.mxu1 %v558_v24  ;;  %897 = vmatpush.bf16.msrb.mxu0 %v1778_v0  ;;  %v389_v24 = vadd.f32 %v388_v58, %v358_v37  ;;  %v462_v0 = vadd.f32 %v461_v62, %v431_v51  ;;  %v435_v51 = vmul.f32 %v2025_v22, %v2025_v22 }
  0x6e   : > { %831 = vmatmul.bf16.vlgmr.msra.gmra.mxu2 %v559_v20  ;;  %926 = vmatpush.bf16.msrb.mxu1 %v1780_v1  ;;  %v360_v20 = vmul.f32 %v2004_v38, %v2004_v38  ;;  %v361_v1 = vmul.f32 %v2015_v60, %v2015_v60 }
  0x6f   : > { %955 = vmatpush.bf16.msrb.mxu2 %v1782_v2  ;;  %860 = vmatmul.bf16.vlgmr.msra.gmra.mxu3 %v560_v48  ;;  %v266_v2 = vld [vmem:[%s1761_s28 + $0x68] sm:$0xff]  ;;  %v390_v57 = vadd.f32 %v389_v24, %v359_v61  ;;  %v463_v27 = vadd.f32 %v462_v0, %v432_v31  ;;  %v269_v61 = vld [vmem:[%s1761_s28 + $0x80] sm:$0xff]  ;;  %v561_v0 = vpack.c.bf16 %v2015_v60, %v1959_v63 }
  0x70   : > { %984 = vmatpush.bf16.msrb.mxu3 %v1784_v3  ;;  %v2008_v3 = vld [vmem:[%s1768_s22 + $0x68] sm:$0xff] }
  0x71   : > { %v330_v48 = vsub.f32 %v266_v2, %v2008_v3  ;;  %898 = vmatpush.bf16.msrb.mxu0 %v1788_v4  ;;  %v391_v50 = vadd.f32 %v390_v57, %v360_v20  ;;  %v464_v58 = vadd.f32 %v463_v27, %v433_v42  ;;  %v2045_v2 = vld [vmem:[%s1768_s22 + $0x80] sm:$0xff]  ;;  %v363_v4 = vmul.f32 %v331_v49, %v331_v49  ;;  %v270_v20 = vld [vmem:[%s1761_s28 + $0x88] sm:$0xff] }
  0x72   : > { %927 = vmatpush.bf16.msrb.mxu1 %v1790_v5  ;;  %v437_v57 = vmul.f32 %v2045_v2, %v2045_v2  ;;  %v2073_v60 = vsub.f32 %v270_v20, %v2052_v32 }
  0x73   : > { %956 = vmatpush.bf16.msrb.mxu2 %v1794_v6  ;;  %v434_v6 = vmul.f32 %v2008_v3, %v2008_v3  ;;  %v362_v37 = vmul.f32 %v330_v48, %v330_v48  ;;  %v392_v5 = vadd.f32 %v391_v50, %v361_v1  ;;  %v272_v50 = vld [vmem:[%s1761_s28 + $0x98] sm:$0xff] }
  0x74   : > { %985 = vmatpush.bf16.msrb.mxu3 %v1796_v7  ;;  %v2034_v7 = vld [vmem:[%s1768_s22 + $0x78] sm:$0xff] }
  0x75   : > { %v332_v62 = vsub.f32 %v268_v35, %v2034_v7  ;;  %v436_v31 = vmul.f32 %v2034_v7, %v2034_v7  ;;  %v465_v24 = vadd.f32 %v464_v58, %v434_v6  ;;  %899 = vmatpush.bf16.msrb.mxu0 %v1800_v8  ;;  %v271_v6 = vld [vmem:[%s1761_s28 + $0x90] sm:$0xff] }
  0x76   : > { %928 = vmatpush.bf16.msrb.mxu1 %v1802_v9  ;;  %v2067_v8 = vld [vmem:[%s1768_s22 + $0x90] sm:$0xff]  ;;  %v562_v9 = vpack.c.bf16 %v330_v48, %v1975_v18  ;;  %v366_v48 = vmul.f32 %v2073_v60, %v2073_v60 }
  0x77   : > { %957 = vmatpush.bf16.msrb.mxu2 %v1806_v10  ;;  %v364_v42 = vmul.f32 %v332_v62, %v332_v62  ;;  %v393_v10 = vadd.f32 %v392_v5, %v362_v37  ;;  %v466_v1 = vadd.f32 %v465_v24, %v435_v51  ;;  %v564_v27 = vpack.c.bf16 %v332_v62, %v2004_v38  ;;  %v2081_v51 = vld [vmem:[%s1768_s22 + $0x98] sm:$0xff]  ;;  %v273_v38 = vld [vmem:[%s1761_s28 + $0xa0] sm:$0xff]  ;;  %v274_v62 = vld [vmem:[%s1761_s28 + $0xa8] sm:$0xff] }
  0x78   : > { %986 = vmatpush.bf16.msrb.mxu3 %v1808_v11  ;;  %v2057_v11 = vsub.f32 %v269_v61, %v2045_v2  ;;  %v438_v37 = vmul.f32 %v2052_v32, %v2052_v32  ;;  %v439_v61 = vmul.f32 %v2067_v8, %v2067_v8  ;;  %v2105_v5 = vld [vmem:[%s1768_s22 + $0xa8] sm:$0xff] }
  0x79   : > { %v394_v35 = vadd.f32 %v393_v10, %v363_v4  ;;  %900 = vmatpush.bf16.msrb.mxu0 %v1812_v12  ;;  %v2101_v4 = vsub.f32 %v272_v50, %v2081_v51  ;;  %v275_v10 = vld [vmem:[%s1761_s28 + $0xb0] sm:$0xff]  ;;  %v277_v50 = vld [vmem:[%s1761_s28 + $0xc0] sm:$0xff] }
  0x7a   : > { %v365_v63 = vmul.f32 %v2057_v11, %v2057_v11  ;;  %929 = vmatpush.bf16.msrb.mxu1 %v1814_v13 }
  0x7b   : > { %958 = vmatpush.bf16.msrb.mxu2 %v1819_v15  ;;  %v563_v15 = vpack.c.bf16 %v331_v49, %v1991_v45  ;;  %v395_v18 = vadd.f32 %v394_v35, %v364_v42  ;;  %v2088_v45 = vsub.f32 %v271_v6, %v2067_v8  ;;  %v2092_v49 = vld [vmem:[%s1768_s22 + $0xa0] sm:$0xff]  ;;  %v368_v20 = vmul.f32 %v2101_v4, %v2101_v4  ;;  %v2131_v35 = vld [vmem:[%s1768_s22 + $0xb8] sm:$0xff] }
  0x7c   : > { %987 = vmatpush.bf16.msrb.mxu3 %v1821_v16  ;;  %v467_v16 = vadd.f32 %v466_v1, %v436_v31  ;;  %778 = vmatmul.bf16.gmra.mxu0 %v561_v0  ;;  %v441_v42 = vmul.f32 %v2092_v49, %v2092_v49  ;;  %v2120_v0 = vld [vmem:[%s1768_s22 + $0xb0] sm:$0xff] }
  0x7d   : > { %807 = vmatmul.bf16.gmra.mxu1 %v562_v9  ;;  %v396_v12 = vadd.f32 %v395_v18, %v365_v63  ;;  %v367_v13 = vmul.f32 %v2088_v45, %v2088_v45  ;;  %901 = vmatpush.bf16.msrb.mxu0 %v1843_v25  ;;  %v338_v25 = vsub.f32 %v274_v62, %v2105_v5  ;;  %v276_v9 = vld [vmem:[%s1761_s28 + $0xb8] sm:$0xff]  ;;  %v2142_v18 = vld [vmem:[%s1768_s22 + $0xc0] sm:$0xff] }
  0x7e   : > { %v468_v58 = vadd.f32 %v467_v16, %v437_v57  ;;  %836 = vmatmul.bf16.gmra.mxu2 %v563_v15  ;;  %930 = vmatpush.bf16.msrb.mxu1 %v1845_v26  ;;  %v442_v26 = vmul.f32 %v2105_v5, %v2105_v5 }
  0x7f   : > { %959 = vmatpush.bf16.msrb.mxu2 %v1854_v29  ;;  %865 = vmatmul.bf16.gmra.mxu3 %v564_v27  ;;  %v440_v29 = vmul.f32 %v2081_v51, %v2081_v51  ;;  %v397_v24 = vadd.f32 %v396_v12, %v366_v48  ;;  %v370_v15 = vmul.f32 %v338_v25, %v338_v25  ;;  %v278_v12 = vld [vmem:[%s1761_s28 + $0xc8] sm:$0xff] }
  0x80   : > { %988 = vmatpush.bf16.msrb.mxu3 %v1856_v30  ;;  %v469_v31 = vadd.f32 %v468_v58, %v438_v37  ;;  %v2110_v30 = vsub.f32 %v273_v38, %v2092_v49  ;;  %v443_v27 = vmul.f32 %v2120_v0, %v2120_v0  ;;  %v340_v38 = vsub.f32 %v276_v9, %v2131_v35  ;;  %v2301_v9 = vld [vmem:[#allocation14_spill] sm:$0xff] }
  0x81   : > { %v398_v6 = vadd.f32 %v397_v24, %v367_v13  ;;  %902 = vmatpush.bf16.msrb.mxu0 %v1873_v39  ;;  %v2153_v13 = vld [vmem:[%s1768_s22 + $0xc8] sm:$0xff]  ;;  %v445_v24 = vmul.f32 %v2142_v18, %v2142_v18 }
  0x82   : > { %v470_v1 = vadd.f32 %v469_v31, %v439_v61  ;;  %v369_v57 = vmul.f32 %v2110_v30, %v2110_v30  ;;  %931 = vmatpush.bf16.msrb.mxu1 %v1877_v41  ;;  %v565_v39 = vpack.c.bf16 %v2110_v30, %v2057_v11  ;;  %v444_v41 = vmul.f32 %v2131_v35, %v2131_v35 }
  0x83   : > { %960 = vmatpush.bf16.msrb.mxu2 %v1887_v46  ;;  %v881_v46 = vpack.c.bf16 %v1862_v33, %v1824_v17  ;;  %v399_v16 = vadd.f32 %v398_v6, %v368_v20  ;;  %v372_v62 = vmul.f32 %v340_v38, %v340_v38  ;;  %v566_v11 = vpack.c.bf16 %v338_v25, %v2073_v60  ;;  %v280_v25 = vld [vmem:[%s1761_s28 + $0xd8] sm:$0xff] }
  0x84   : > { %989 = vmatpush.bf16.msrb.mxu3 %v1889_v47  ;;  %v471_v63 = vadd.f32 %v470_v1, %v440_v29  ;;  %v339_v47 = vsub.f32 %v275_v10, %v2120_v0  ;;  %v279_v29 = vld [vmem:[%s1761_s28 + $0xd0] sm:$0xff]  ;;  %v342_v1 = vsub.f32 %v278_v12, %v2153_v13  ;;  %v2175_v6 = vld [vmem:[%s1768_s22 + $0xd8] sm:$0xff] }
  0x85   : > { %v400_v58 = vadd.f32 %v399_v16, %v369_v57  ;;  %903 = vmatpush.bf16.msrb.mxu0 %v1905_v55  ;;  %v568_v57 = vpack.c.bf16 %v340_v38, %v2101_v4  ;;  %v882_v4 = vpack.c.bf16 %v1881_v43, %v1833_v21  ;;  %v2194_v38 = vld [vmem:[%s1768_s22 + $0xe0] sm:$0xff]  ;;  %v2202_v12 = vld [vmem:[%s1768_s22 + $0xf0] sm:$0xff] }
  0x86   : > { %v472_v37 = vadd.f32 %v471_v63, %v441_v42  ;;  %v371_v48 = vmul.f32 %v339_v47, %v339_v47  ;;  %932 = vmatpush.bf16.msrb.mxu1 %v1916_v59  ;;  %v567_v20 = vpack.c.bf16 %v339_v47, %v2088_v45  ;;  %v446_v59 = vmul.f32 %v2153_v13, %v2153_v13  ;;  %v2303_v47 = vld [vmem:[#allocation15_spill] sm:$0xff] }
  0x87   : > { %961 = vmatpush.bf16.msrb.mxu2 %v1926_v14  ;;  %v401_v31 = vadd.f32 %v400_v58, %v370_v15  ;;  %v341_v14 = vsub.f32 %v277_v50, %v2142_v18  ;;  %v883_v63 = vpack.c.bf16 %v2301_v9, %v1850_v28  ;;  %v2302_v15 = vld [vmem:[#allocation13_spill] sm:$0xff]  ;;  %v885_v28 = vpack.c.bf16 %v1997_v40, %v1937_v34 }
  0x88   : > { %990 = vmatpush.bf16.msrb.mxu3 %v1928_v19  ;;  %v473_v61 = vadd.f32 %v472_v37, %v442_v26  ;;  %v2158_v19 = vld [vmem:[%s1768_s22 + $0xd0] sm:$0xff]  ;;  %v374_v26 = vmul.f32 %v342_v1, %v342_v1  ;;  %v884_v16 = vpack.c.bf16 %v2303_v47, %v2302_v15 }
  0x89   : > { %v402_v42 = vadd.f32 %v401_v31, %v371_v48  ;;  %v373_v10 = vmul.f32 %v341_v14, %v341_v14  ;;  %v343_v60 = vsub.f32 %v279_v29, %v2158_v19  ;;  %904 = vmatpush.bf16.msrb.mxu0 %v1939_v36  ;;  %v281_v48 = vld [vmem:[%s1761_s28 + $0xe0] sm:$0xff]  ;;  %v2206_v31 = vld [vmem:[%s1768_s22 + $0xf8] sm:$0xff]  ;;  %v895_v17 = vpack.c.bf16 %v2202_v12, %v2158_v19 }
  0x8a   : > { %v474_v30 = vadd.f32 %v473_v61, %v443_v27  ;;  %933 = vmatpush.bf16.msrb.mxu1 %v1944_v44  ;;  %v344_v27 = vsub.f32 %v280_v25, %v2175_v6  ;;  %v283_v61 = vld [vmem:[%s1761_s28 + $0xf0] sm:$0xff]  ;;  %v345_v34 = vsub.f32 %v281_v48, %v2194_v38  ;;  %v889_v25 = vpack.c.bf16 %v2092_v49, %v2045_v2 }
  0x8b   : > { %962 = vmatpush.bf16.msrb.mxu2 %v1954_v54  ;;  %v403_v54 = vadd.f32 %v402_v42, %v372_v62  ;;  %v375_v44 = vmul.f32 %v343_v60, %v343_v60  ;;  %v284_v62 = vld [vmem:[%s1761_s28 + $0xf8] sm:$0xff]  ;;  %v896_v33 = vpack.c.bf16 %v2206_v31, %v2175_v6 }
  0x8c   : > { %991 = vmatpush.bf16.msrb.mxu3 %v1956_v56  ;;  %v475_v55 = vadd.f32 %v474_v30, %v444_v41  ;;  %v447_v56 = vmul.f32 %v2158_v19, %v2158_v19  ;;  %783 = vmatmul.bf16.gmra.mxu0 %v565_v39  ;;  %v376_v37 = vmul.f32 %v344_v27, %v344_v27  ;;  %v282_v39 = vld [vmem:[%s1761_s28 + $0xe8] sm:$0xff]  ;;  %s1555_s28 = scalar_lea.hbm %s1554_s27, 8 }
  0x8d   : > { %812 = vmatmul.bf16.gmra.mxu1 %v566_v11  ;;  %v404_v36 = vadd.f32 %v403_v54, %v373_v10  ;;  %v2198_v41 = vld [vmem:[%s1768_s22 + $0xe8] sm:$0xff]  ;;  %v347_v11 = vsub.f32 %v283_v61, %v2202_v12  ;;  %v348_v30 = vsub.f32 %v284_v62, %v2206_v31  ;;  %p1556_p1 = scmp.ne.s32.totalorder %s1554_s27, %s1555_s28  ;;  %s1559_s22 = scalar_lea.hbm %s2285_s3, 16 }
  0x8e   : > { %v476_v45 = vadd.f32 %v475_v55, %v445_v24  ;;  %841 = vmatmul.bf16.gmra.mxu2 %v567_v20  ;;  %v346_v40 = vsub.f32 %v282_v39, %v2198_v41  ;;  %v569_v24 = vpack.c.bf16 %v345_v34, %v341_v14  ;;  %v886_v55 = vpack.c.bf16 %v2008_v3, %v1950_v53  ;;  %p1561_p10 = scmp.lt.s32.totalorder %s1559_s22, %s1555_s28 }
  0x8f   : > { %870 = vmatmul.bf16.gmra.mxu3 %v568_v57  ;;  %v405_v43 = vadd.f32 %v404_v36, %v374_v26  ;;  %v571_v42 = vpack.c.bf16 %v347_v11, %v343_v60  ;;  %v572_v10 = vpack.c.bf16 %v348_v30, %v344_v27  ;;  %v887_v57 = vpack.c.bf16 %v2025_v22, %v1969_v52  ;;  %p1557_p4 = pnand %p1556_p1, %p1707_p7 }
  0x90   : > { %v477_v21 = vadd.f32 %v476_v45, %v446_v59  ;;  %v570_v20 = vpack.c.bf16 %v346_v40, %v342_v1  ;;  %v888_v59 = vpack.c.bf16 %v2034_v7, %v1984_v23  ;;  %v890_v14 = vpack.c.bf16 %v2105_v5, %v2052_v32  ;;  %p1562_p2 = por %p1561_p10, %p1560_p9 }
  0x91   : > { %v406_v58 = vadd.f32 %v405_v43, %v375_v44  ;;  %v891_v1 = vpack.c.bf16 %v2120_v0, %v2067_v8  ;;  %v892_v53 = vpack.c.bf16 %v2131_v35, %v2081_v51  ;;  %v893_v52 = vpack.c.bf16 %v2194_v38, %v2142_v18  ;;  %p1558_p8 = pneg %p1557_p4 }
  0x92   : > { %v2190_v50 = vadd.f32 %v477_v21, %v447_v56  ;;  %v894_v23 = vpack.c.bf16 %v2198_v41, %v2153_v13  ;;  %v377_v35 = vmul.f32 %v345_v34, %v345_v34  ;;  %v448_v26 = vmul.f32 %v2175_v6, %v2175_v6 }
  0x93   : > { %v407_v29 = vadd.f32 %v406_v58, %v376_v37  ;;  %v379_v56 = vmul.f32 %v347_v11, %v347_v11  ;;  %v380_v9 = vmul.f32 %v348_v30, %v348_v30  ;;  %v450_v21 = vmul.f32 %v2198_v41, %v2198_v41  ;;  %p1563_p11 = pnand %p1562_p2, %p1558_p8 }
  0x94   : > { %v479_v47 = vadd.f32 %v2190_v50, %v448_v26  ;;  %v451_v6 = vmul.f32 %v2202_v12, %v2202_v12  ;;  %v452_v37 = vmul.f32 %v2206_v31, %v2206_v31 }
  0x95   : > { %v408_v54 = vadd.f32 %v407_v29, %v377_v35 }
  0x9c   : > { %788 = vmatmul.bf16.gmra.mxu0 %v569_v24 }
  0x9d   : > { %817 = vmatmul.bf16.gmra.mxu1 %v570_v20 }
  0x9e   : > { %846 = vmatmul.bf16.gmra.mxu2 %v571_v42 }
  0x9f   : > { %875 = vmatmul.bf16.gmra.mxu3 %v572_v10 }
  0xac   : > { %905 = vmatmul.bf16.vlgmr.msrb.gmra.mxu0 %v881_v46  ;;  %v378_v46 = vmul.f32 %v346_v40, %v346_v40 }
  0xad   : > { %934 = vmatmul.bf16.vlgmr.msrb.gmra.mxu1 %v882_v4  ;;  %v449_v4 = vmul.f32 %v2194_v38, %v2194_v38 }
  0xae   : > { %963 = vmatmul.bf16.vlgmr.msrb.gmra.mxu2 %v883_v63  ;;  %v409_v45 = vadd.f32 %v408_v54, %v378_v46 }
  0xaf   : > { %992 = vmatmul.bf16.vlgmr.msrb.gmra.mxu3 %v884_v16 }
  0xb0   : > { %v410_v63 = vadd.f32 %v409_v45, %v379_v56 }
  0xb2   : > { %v411_v15 = vadd.f32 %v410_v63, %v380_v9 }
  0xb4   : > { %412 = vadd.xlane.f32.xlu0 %v411_v15 }
  0xbc   : > { %910 = vmatmul.bf16.gmra.mxu0 %v885_v28  ;;  %v480_v28 = vadd.f32 %v479_v47, %v449_v4 }
  0xbd   : > { %939 = vmatmul.bf16.gmra.mxu1 %v886_v55 }
  0xbe   : > { %968 = vmatmul.bf16.gmra.mxu2 %v887_v57  ;;  %v481_v43 = vadd.f32 %v480_v28, %v450_v21 }
  0xbf   : > { %997 = vmatmul.bf16.gmra.mxu3 %v888_v59 }
  0xc0   : > { %v482_v48 = vadd.f32 %v481_v43, %v451_v6 }
  0xc2   : > { %v483_v38 = vadd.f32 %v482_v48, %v452_v37 }
  0xc4   : > { %484 = vadd.xlane.f32.xlu0 %v483_v38 }
  0xcc   : > { %915 = vmatmul.bf16.gmra.mxu0 %v889_v25 }
  0xcd   : > { %944 = vmatmul.bf16.gmra.mxu1 %v890_v14 }
  0xce   : > { %973 = vmatmul.bf16.gmra.mxu2 %v891_v1 }
  0xcf   : > { %1002 = vmatmul.bf16.gmra.mxu3 %v892_v53 }
  0xdc   : > { %920 = vmatmul.bf16.gmra.mxu0 %v893_v52 }
  0xdd   : > { %949 = vmatmul.bf16.gmra.mxu1 %v894_v23 }
  0xde   : > { %978 = vmatmul.bf16.gmra.mxu2 %v895_v17 }
  0xdf   : > { %1007 = vmatmul.bf16.gmra.mxu3 %v896_v33 }
  0xe9   : > { %v774_v3 = vpop.f32.mrf.mxu0 }
  0xea   : > { %v803_v22 = vpop.f32.mrf.mxu1 }
  0xeb   : > { %v804_v62 = vadd.f32 %v803_v22, %v774_v3 }
  0xf1   : > { %v832_v7 = vpop.f32.mrf.mxu2  ;;  %v776_v32 = vpop.f32.mrf.mxu0 }
  0xf2   : > { %v861_v2 = vpop.f32.mrf.mxu3  ;;  %v805_v8 = vpop.f32.mrf.mxu1  ;;  %v833_v41 = vadd.f32 %v832_v7, %v804_v62 }
  0xf3   : > { %v806_v29 = vadd.f32 %v805_v8, %v776_v32 }
  0xf4   : > { %v862_v57 = vadd.f32 %v861_v2, %v833_v41 }
  0xf6   : > { %v1013_v3 = vmul.f32 %v862_v57, %v862_v57 }
  0xf9   : > { %v834_v51 = vpop.f32.mrf.mxu2  ;;  %v779_v5 = vpop.f32.mrf.mxu0 }
  0xfa   : > { %v863_v49 = vpop.f32.mrf.mxu3  ;;  %v808_v0 = vpop.f32.mrf.mxu1  ;;  %v835_v40 = vadd.f32 %v834_v51, %v806_v29 }
  0xfb   : > { %v809_v34 = vadd.f32 %v808_v0, %v779_v5 }
  0xfc   : > { %v864_v31 = vadd.f32 %v863_v49, %v835_v40 }
  0xfe   : > { %v1014_v53 = vmul.f32 %v864_v31, %v864_v31 }
 0x100   : > { %v1021_v5 = vadd.f32 %v1014_v53, %v1013_v3 }
 0x101   : > { %v837_v18 = vpop.f32.mrf.mxu2  ;;  %v781_v19 = vpop.f32.mrf.mxu0 }
 0x102   : > { %v866_v13 = vpop.f32.mrf.mxu3  ;;  %v810_v60 = vpop.f32.mrf.mxu1  ;;  %v838_v24 = vadd.f32 %v837_v18, %v809_v34 }
 0x103   : > { %v811_v12 = vadd.f32 %v810_v60, %v781_v19 }
 0x104   : > { %v867_v59 = vadd.f32 %v866_v13, %v838_v24 }
 0x106   : > { %v1015_v22 = vmul.f32 %v867_v59, %v867_v59 }
 0x108   : > { %v1022_v35 = vadd.f32 %v1021_v5, %v1015_v22 }
 0x109   : > { %v839_v16 = vpop.f32.mrf.mxu2  ;;  %v784_v44 = vpop.f32.mrf.mxu0 }
 0x10a   : > { %v868_v36 = vpop.f32.mrf.mxu3  ;;  %v813_v27 = vpop.f32.mrf.mxu1  ;;  %v840_v55 = vadd.f32 %v839_v16, %v811_v12 }
 0x10b   : > { %v814_v20 = vadd.f32 %v813_v27, %v784_v44 }
 0x10c   : > { %v869_v52 = vadd.f32 %v868_v36, %v840_v55 }
 0x10e   : > { %v1016_v0 = vmul.f32 %v869_v52, %v869_v52 }
 0x110   : > { %v1023_v18 = vadd.f32 %v1022_v35, %v1016_v0 }
 0x111   : > { %v842_v58 = vpop.f32.mrf.mxu2  ;;  %v786_v39 = vpop.f32.mrf.mxu0 }
 0x112   : > { %v871_v50 = vpop.f32.mrf.mxu3  ;;  %v815_v61 = vpop.f32.mrf.mxu1  ;;  %v843_v25 = vadd.f32 %v842_v58, %v814_v20 }
 0x113   : > { %v816_v14 = vadd.f32 %v815_v61, %v786_v39 }
 0x114   : > { %v872_v7 = vadd.f32 %v871_v50, %v843_v25 }
 0x116   : > { %v1017_v2 = vmul.f32 %v872_v7, %v872_v7 }
 0x118   : > { %v1024_v26 = vadd.f32 %v1023_v18, %v1017_v2 }
 0x119   : > { %v844_v11 = vpop.f32.mrf.mxu2  ;;  %v789_v42 = vpop.f32.mrf.mxu0 }
 0x11a   : > { %v873_v30 = vpop.f32.mrf.mxu3  ;;  %v818_v10 = vpop.f32.mrf.mxu1  ;;  %v845_v23 = vadd.f32 %v844_v11, %v816_v14 }
 0x11b   : > { %v819_v1 = vadd.f32 %v818_v10, %v789_v42 }
 0x11c   : > { %v874_v49 = vadd.f32 %v873_v30, %v845_v23 }
 0x11e   : > { %v1018_v13 = vmul.f32 %v874_v49, %v874_v49 }
 0x120   : > { %v1025_v63 = vadd.f32 %v1024_v26, %v1018_v13 }
 0x121   : > { %v847_v17 = vpop.f32.mrf.mxu2  ;;  %v791_v8 = vpop.f32.mrf.mxu0 }
 0x122   : > { %v876_v33 = vpop.f32.mrf.mxu3  ;;  %v848_v32 = vadd.f32 %v847_v17, %v819_v1  ;;  %v820_v51 = vpop.f32.mrf.mxu1 }
 0x123   : > { %v821_v19 = vadd.f32 %v820_v51, %v791_v8 }
 0x124   : > { %v877_v46 = vadd.f32 %v876_v33, %v848_v32 }
 0x126   : > { %v1019_v56 = vmul.f32 %v877_v46, %v877_v46 }
 0x128   : > { %v1026_v16 = vadd.f32 %v1025_v63, %v1019_v56 }
 0x129   : > { %v849_v60 = vpop.f32.mrf.mxu2  ;;  %v906_v4 = vpop.f32.mrf.mxu0 }
 0x12a   : > { %v878_v54 = vpop.f32.mrf.mxu3  ;;  %v850_v45 = vadd.f32 %v849_v60, %v821_v19  ;;  %v935_v9 = vpop.f32.mrf.mxu1 }
 0x12b   : > { %v936_v24 = vadd.f32 %v935_v9, %v906_v4 }
 0x12c   : > { %v879_v15 = vadd.f32 %v878_v54, %v850_v45 }
 0x12e   : > { %v1020_v47 = vmul.f32 %v879_v15, %v879_v15 }
 0x130   : > { %v1027_v36 = vadd.f32 %v1026_v16, %v1020_v47 }
 0x131   : > { %v964_v44 = vpop.f32.mrf.mxu2  ;;  %v908_v21 = vpop.f32.mrf.mxu0 }
 0x132   : > { %v993_v27 = vpop.f32.mrf.mxu3  ;;  %1028 = vadd.xlane.f32.xlu1 %v1027_v36  ;;  %v937_v28 = vpop.f32.mrf.mxu1  ;;  %v965_v10 = vadd.f32 %v964_v44, %v936_v24 }
 0x133   : > { %v938_v12 = vadd.f32 %v937_v28, %v908_v21 }
 0x134   : > { %v994_v23 = vadd.f32 %v993_v27, %v965_v10 }
 0x136   : > { %v1037_v0 = vmul.f32 %v994_v23, %v994_v23 }
 0x139   : > { %v966_v6 = vpop.f32.mrf.mxu2  ;;  %v911_v37 = vpop.f32.mrf.mxu0 }
 0x13a   : > { %v995_v43 = vpop.f32.mrf.mxu3  ;;  %v940_v48 = vpop.f32.mrf.mxu1  ;;  %v967_v42 = vadd.f32 %v966_v6, %v938_v12 }
 0x13b   : > { %v941_v20 = vadd.f32 %v940_v48, %v911_v37 }
 0x13c   : > { %v996_v53 = vadd.f32 %v995_v43, %v967_v42  ;;  %v413_v43 = vpop.xlane.xlu0 %412 }
 0x13d   : > { %v414_v37 = vrot.slane %v413_v43, 4 }
 0x13e   : > { %v1038_v7 = vmul.f32 %v996_v53, %v996_v53 }
 0x13f   : > { %v415_v48 = vadd.f32 %v414_v37, %v413_v43 }
 0x140   : > { %v1045_v46 = vadd.f32 %v1038_v7, %v1037_v0 }
 0x141   : > { %v969_v38 = vpop.f32.mrf.mxu2  ;;  %v913_v50 = vpop.f32.mrf.mxu0 }
 0x142   : > { %v998_v58 = vpop.f32.mrf.mxu3  ;;  %v942_v39 = vpop.f32.mrf.mxu1  ;;  %v970_v57 = vadd.f32 %v969_v38, %v941_v20 }
 0x143   : > { %v943_v59 = vadd.f32 %v942_v39, %v913_v50 }
 0x144   : > { %v999_v17 = vadd.f32 %v998_v58, %v970_v57  ;;  %v485_v38 = vpop.xlane.xlu0 %484  ;;  %v416_v58 = vrot.slane %v415_v48, 2 }
 0x145   : > { %v486_v50 = vrot.slane %v485_v38, 4 }
 0x146   : > { %v1039_v49 = vmul.f32 %v999_v17, %v999_v17 }
 0x147   : > { %v487_v39 = vadd.f32 %v486_v50, %v485_v38 }
 0x148   : > { %v1046_v54 = vadd.f32 %v1045_v46, %v1039_v49 }
 0x149   : > { %v971_v61 = vpop.f32.mrf.mxu2  ;;  %v916_v29 = vpop.f32.mrf.mxu0 }
 0x14a   : > { %v1000_v62 = vpop.f32.mrf.mxu3  ;;  %v945_v34 = vpop.f32.mrf.mxu1  ;;  %v972_v52 = vadd.f32 %v971_v61, %v943_v59  ;;  %v488_v61 = vrot.slane %v487_v39, 2 }
 0x14b   : > { %v946_v25 = vadd.f32 %v945_v34, %v916_v29 }
 0x14c   : > { %v1001_v32 = vadd.f32 %v1000_v62, %v972_v52  ;;  %v417_v62 = vadd.f32 %v416_v58, %v415_v48  ;;  %v489_v29 = vadd.f32 %v488_v61, %v487_v39  ;;  %v1063_v52 = vlaneseq }
 0x14e   : > { %v1040_v18 = vmul.f32 %v1001_v32, %v1001_v32  ;;  %v418_v34 = vrot.slane %v417_v62, 1  ;;  %v1064_v23 = vshrl.u32 %v1063_v52, 7 }
 0x150   : > { %v1047_v45 = vadd.f32 %v1046_v54, %v1040_v18  ;;  %vm1065_vm0 = vcmp.eq.s32.totalorder %v1064_v23, 0 }
 0x151   : > { %v974_v40 = vpop.f32.mrf.mxu2  ;;  %v918_v11 = vpop.f32.mrf.mxu0 }
 0x152   : > { %v1003_v41 = vpop.f32.mrf.mxu3  ;;  %v947_v30 = vpop.f32.mrf.mxu1  ;;  %v975_v33 = vadd.f32 %v974_v40, %v946_v25  ;;  %v419_v40 = vadd.f32 %v418_v34, %v417_v62 }
 0x153   : > { %v948_v3 = vadd.f32 %v947_v30, %v918_v11 }
 0x154   : > { %v1004_v35 = vadd.f32 %v1003_v41, %v975_v33  ;;  %v490_v41 = vrot.slane %v489_v29, 1  ;;  %1375 = vpush %v419_v40 }
 0x156   : > { %v1041_v26 = vmul.f32 %v1004_v35, %v1004_v35  ;;  %v491_v11 = vadd.f32 %v490_v41, %v489_v29 }
 0x158   : > { %v1048_v15 = vadd.f32 %v1047_v45, %v1041_v26  ;;  %1377 = vpush %v491_v11 }
 0x159   : > { %v976_v31 = vpop.f32.mrf.mxu2  ;;  %v921_v14 = vpop.f32.mrf.mxu0 }
 0x15a   : > { %v1005_v55 = vpop.f32.mrf.mxu3  ;;  %v950_v1 = vpop.f32.mrf.mxu1  ;;  %v977_v8 = vadd.f32 %v976_v31, %v948_v3 }
 0x15b   : > { %v951_v22 = vadd.f32 %v950_v1, %v921_v14 }
 0x15c   : > { %v1006_v13 = vadd.f32 %v1005_v55, %v977_v8 }
 0x15e   : > { %v1042_v4 = vmul.f32 %v1006_v13, %v1006_v13 }
 0x160   : > { %v1049_v44 = vadd.f32 %v1048_v15, %v1042_v4 }
 0x161   : > { %v979_v51 = vpop.f32.mrf.mxu2  ;;  %v923_v19 = vpop.f32.mrf.mxu0 }
 0x162   : > { %v1008_v5 = vpop.f32.mrf.mxu3  ;;  %v980_v2 = vadd.f32 %v979_v51, %v951_v22  ;;  %v952_v60 = vpop.f32.mrf.mxu1 }
 0x163   : > { %v953_v9 = vadd.f32 %v952_v60, %v923_v19 }
 0x164   : > { %v1009_v56 = vadd.f32 %v1008_v5, %v980_v2 }
 0x166   : > { %v1043_v47 = vmul.f32 %v1009_v56, %v1009_v56 }
 0x168   : > { %v1050_v21 = vadd.f32 %v1049_v44, %v1043_v47 }
 0x169   : > { %v981_v63 = vpop.f32.mrf.mxu2 }
 0x16a   : > { %v982_v16 = vadd.f32 %v981_v63, %v953_v9  ;;  %v1010_v36 = vpop.f32.mrf.mxu3 }
 0x16c   : > { %v1011_v27 = vadd.f32 %v1010_v36, %v982_v16 }
 0x16e   : > { %v1044_v28 = vmul.f32 %v1011_v27, %v1011_v27 }
 0x170   : > { %v1051_v6 = vadd.f32 %v1050_v21, %v1044_v28 }
 0x172   : > { %1052 = vadd.xlane.f32.xlu1 %v1051_v6 }
 0x185   : > { %s1376_s18 = spop %1375 }
 0x189   : > { %s1378_s7 = spop %1377 }
 0x1a5   : > { %v1029_v30 = vpop.xlane.xlu1 %1028 }
 0x1a6   : > { %v1030_v24 = vrot.slane %v1029_v30, 4 }
 0x1a8   : > { %v1031_v12 = vadd.f32 %v1030_v24, %v1029_v30 }
 0x1aa   : > { %v1032_v20 = vrot.slane %v1031_v12, 2 }
 0x1ac   : > { %v1033_v42 = vadd.f32 %v1032_v20, %v1031_v12 }
 0x1ae   : > { %v1034_v10 = vrot.slane %v1033_v42, 1 }
 0x1b0   : > { %v1035_v31 = vadd.f32 %v1034_v10, %v1033_v42 }
 0x1b2   : > { %1379 = vpush %v1035_v31 }
 0x1e3   : > { %s1380_s9 = spop %1379 }
 0x1e4   : > { %s1061_s30 = ssub.f32 %s1376_s18, %s1380_s9 }
 0x1e5   : > { %v1053_v55 = vpop.xlane.xlu1 %1052 }
 0x1e6   : > { %v1054_v57 = vrot.slane %v1053_v55, 4  ;;  %v1066_v17 = vstv %s1061_s30 }
 0x1e8   : > { %v1055_v59 = vadd.f32 %v1054_v57, %v1053_v55 }
 0x1ea   : > { %v1056_v25 = vrot.slane %v1055_v59, 2 }
 0x1ec   : > { %v1057_v14 = vadd.f32 %v1056_v25, %v1055_v59 }
 0x1ee   : > { %v1058_v1 = vrot.slane %v1057_v14, 1 }
 0x1f0   : > { %v1059_v53 = vadd.f32 %v1058_v1, %v1057_v14 }
 0x1f2   : > { %1381 = vpush %v1059_v53 }
 0x223   : > { %s1382_s17 = spop %1381 }
 0x224   : > { %s1062_s8 = ssub.f32 %s1378_s7, %s1382_s17 }
 0x226   : > { %v1068_v33 = vstv %s1062_s8 }
 0x227   : > { %v1070_v3 = vsel %vm1065_vm0, %v1066_v17, %v1068_v33 }
 0x228   : > { %1071 = vst [vmem:[%s250_s11] sm:$0xff] %v1070_v3 }
 0x229   : > { %1566 = shalt.err (!%p1563_p11)
}
 0x22a   : > { %1391 = dma.vmem_to_hbm [thread:$0]  (%p1707_p7), %s1086_s24, 128, %s1088_s21, %s1073_s16  }
 0x22b PF: > { %s1099_s2 = sand.u32 1, %s1601_s12   ;;  %p2304_p12 = scmp.ge.s32.totalorder %s1613_s15, 2 }
 0x22c   : > { %s1100_s7 = scalar_lea.sflag [#allocation4], %s1099_s2 }
 0x22d   : > { %p1405_p13 = pnand %p2304_p12, %p1675_p6 }
 0x22f   : > { %p1406_p0 = pneg %p1405_p13 }
 0x231   : > { %1596 = dma.done.wait (%p1406_p0), %s1100_s7, 128  }
 0x232   : > { %1598 = vsyncadd (%p1406_p0), %s1100_s7, 4294967168  ;;  %p19_p3 = scmp.ge.s32.totalorder %s1693_s26, 4   ;;  %s2305_s12 = smov %s1605_s13 }
 0x233   : > { %s2306_s13 = smov %s1609_s14  ;;  %s2307_s14 = smov %s1703_s4 }
 0x234   : > { %s2308_s15 = smov %s1693_s26  ;;  %21 = sbr.rel (!%p19_p3) target bundleno = 10 (0xa), region = 94 }
 0x239   :  { %1106 = vsyncpa [#allocation3], 1 }
 0x23a   :  { %1108 = vsyncpa [#allocation3 + $0x1], 1 }
 0x23b   :  { %1109 = vsyncpa [#allocation6], 1 }
 0x23c   :  { %1111 = vsyncpa [#allocation6 + $0x1], 1 }
 0x23d   :  { %1112 = vsyncpa [#allocation4], 1 }
 0x23e   :  { %1114 = vsyncpa [#allocation4 + $0x1], 1 }

</bundles_post_ra>
